<compile_context>
chip_gen: v5e
topology: v5e:2x2
jax: 0.10.0
libtpu: 0.0.40
codegen_flags: <defaults>
</compile_context>

<pallas_src>
import jax
import jax.numpy as jnp
import numpy as np
from jax.experimental import pallas as pl
from jax.experimental.pallas import tpu as pltpu


def _make_lstm_kernel(T_actual, T_chunk, B_pad, H, unroll):
    """Builds the per-time-chunk kernel body; static shapes are closed over."""
    need_mask = (T_actual % T_chunk) != 0

    def kernel(x_ref, wih_ref, whh_ref, b_ref, fcw_ref, fcb_ref, out_ref,
               pre_ref, h_ref, c_ref):
        # x_ref:   (T_chunk*B_pad, E) bf16  -- current time chunk, row blocks of B_pad
        # wih_ref: (E, 4H) bf16   whh_ref: (H, 4H) bf16
        # b_ref:   (1, 4H) f32    fcw_ref: (H, O) bf16   fcb_ref: (1, O) f32
        # out_ref: (B_pad, O) f32 (resident across the grid; written on last chunk)
        # pre_ref: (T_chunk*B_pad, 4H) f32 scratch -- hoisted input projection
        # h_ref/c_ref: (B_pad, H) f32 scratch carried across grid steps
        chunk = pl.program_id(0)

        @pl.when(chunk == 0)
        def _():
            h_ref[...] = jnp.zeros_like(h_ref)
            c_ref[...] = jnp.zeros_like(c_ref)

        # Hoisted input projection + bias: one big-M matmul per chunk.
        pre_ref[...] = (
            jnp.dot(x_ref[...], wih_ref[...], preferred_element_type=jnp.float32)
            + b_ref[...])

        whh = whh_ref[...]  # loop-invariant weight load, hoisted

        def step(t, carry):
            h, c = carry                                          # (B_pad, H) f32
            row = pl.multiple_of(t * B_pad, B_pad)
            pg = pre_ref[pl.ds(row, B_pad), :]                    # (B_pad, 4H) f32
            gates = pg + jnp.dot(h.astype(whh.dtype), whh,
                                 preferred_element_type=jnp.float32)
            # One sigmoid pass over the full 4H block, tanh only on the g slice.
            sg = jax.nn.sigmoid(gates)
            g = jnp.tanh(gates[:, 2 * H:3 * H])
            c_new = sg[:, 1 * H:2 * H] * c + sg[:, 0 * H:1 * H] * g
            h_new = sg[:, 3 * H:4 * H] * jnp.tanh(c_new)
            if need_mask:  # skip zero-padded trailing time steps
                valid = (chunk * T_chunk + t) < T_actual
                h_new = jnp.where(valid, h_new, h)
                c_new = jnp.where(valid, c_new, c)
            return h_new, c_new

        h_T, c_T = jax.lax.fori_loop(0, T_chunk, step,
                                     (h_ref[...], c_ref[...]),
                                     unroll=unroll)
        h_ref[...] = h_T
        c_ref[...] = c_T

        @pl.when(chunk == pl.num_programs(0) - 1)
        def _():
            out_ref[...] = (
                jnp.dot(h_ref[...].astype(fcw_ref.dtype), fcw_ref[...],
                        preferred_element_type=jnp.float32)
                + fcb_ref[...])

    return kernel


def text_classifier_forward(token_ids, embedding, w_ih, w_hh, b, fc_w, fc_b,
                            *, time_chunk=4, unroll=4,
                            compute_dtype=jnp.bfloat16):
    """token_ids: (B, T) int32; returns logits (B, O) float32."""
    B, T = token_ids.shape
    E = embedding.shape[1]
    H = w_hh.shape[0]
    O = fc_w.shape[1]

    B_pad = ((B + 15) // 16) * 16            # bf16 sublane tile = 16 rows
    Tc = max(1, min(time_chunk, T))
    T_pad = ((T + Tc - 1) // Tc) * Tc
    n_chunks = T_pad // Tc
    unroll = max(1, min(unroll, Tc))

    # Glue: embedding gather directly in (T, B, E) order fused with the bf16 cast.
    # TODO(synk): at production vocab/seq, scalar-prefetch token ids and gather
    # embedding rows HBM->VMEM inside the kernel (pl.Element / make_async_copy).
    x = jnp.take(embedding, token_ids.T, axis=0).astype(compute_dtype)  # (T,B,E)
    x = jnp.pad(x, ((0, T_pad - T), (0, B_pad - B), (0, 0)))
    x = x.reshape(T_pad * B_pad, E)          # time-major row blocks, 2-D

    wih = w_ih.astype(compute_dtype)
    whh = w_hh.astype(compute_dtype)
    fcw = fc_w.astype(compute_dtype)
    b32 = b.astype(jnp.float32)
    fcb32 = fc_b.astype(jnp.float32)

    kernel = _make_lstm_kernel(T, Tc, B_pad, H, unroll)

    # Explicit VMEM budget: resident weights + multi-buffered x chunk + scratch.
    vmem_bytes = (
        3 * Tc * B_pad * E * 2                      # streamed x chunk (bf16)
        + (E + H) * 4 * H * 2 + H * O * 2           # weights (bf16)
        + (4 * H + O) * 4 * 2                       # biases (f32)
        + Tc * B_pad * 4 * H * 4                    # pre-gates scratch (f32)
        + 2 * B_pad * H * 4                         # h, c scratch (f32)
        + 2 * B_pad * O * 4)                        # logits
    vmem_limit = int(min(max(2 * vmem_bytes, 4 << 20), 96 << 20))

    grid_spec = pltpu.PrefetchScalarGridSpec(
        num_scalar_prefetch=0,
        grid=(n_chunks,),
        in_specs=[
            pl.BlockSpec((Tc * B_pad, E), lambda t: (t, 0)),   # streamed chunk
            pl.BlockSpec((E, 4 * H), lambda t: (0, 0)),        # W_ih (resident)
            pl.BlockSpec((H, 4 * H), lambda t: (0, 0)),        # W_hh (resident)
            pl.BlockSpec((1, 4 * H), lambda t: (0, 0)),        # bias
            pl.BlockSpec((H, O), lambda t: (0, 0)),            # fc weight
            pl.BlockSpec((1, O), lambda t: (0, 0)),            # fc bias
        ],
        out_specs=pl.BlockSpec((B_pad, O), lambda t: (0, 0)),
        scratch_shapes=[
            pltpu.VMEM((Tc * B_pad, 4 * H), jnp.float32),      # pre-gates
            pltpu.VMEM((B_pad, H), jnp.float32),               # h
            pltpu.VMEM((B_pad, H), jnp.float32),               # c
        ])

    logits = pl.pallas_call(
        kernel,
        out_shape=jax.ShapeDtypeStruct((B_pad, O), jnp.float32),
        grid_spec=grid_spec,
        compiler_params=pltpu.CompilerParams(
            dimension_semantics=("arbitrary",),
            vmem_limit_bytes=vmem_limit),
    )(x, wih, whh, b32, fcw, fcb32)

    return logits[:B]


def reference_forward(token_ids, embedding, w_ih, w_hh, b, fc_w, fc_b,
                      compute_dtype=jnp.bfloat16):
    """Pure-JAX reference matching PyTorch nn.LSTM semantics (gate order i,f,g,o),
    mirroring the kernel's bf16 quantization of MXU operands and split matmuls."""
    B = token_ids.shape[0]
    H = w_hh.shape[0]

    def q(a):  # same quantization the kernel applies to MXU operands
        return a.astype(compute_dtype).astype(jnp.float32)

    x = jnp.take(embedding, token_ids.T, axis=0)        # (T, B, E)
    wih = q(w_ih)
    whh = q(w_hh)
    fcw = q(fc_w)

    def step(carry, x_t):
        h, c = carry
        gates = q(x_t) @ wih + q(h) @ whh + b[0]
        i = jax.nn.sigmoid(gates[:, 0 * H:1 * H])
        f = jax.nn.sigmoid(gates[:, 1 * H:2 * H])
        g = jnp.tanh(gates[:, 2 * H:3 * H])
        o = jax.nn.sigmoid(gates[:, 3 * H:4 * H])
        c = f * c + i * g
        h = o * jnp.tanh(c)
        return (h, c), None

    h0 = jnp.zeros((B, H), jnp.float32)
    c0 = jnp.zeros((B, H), jnp.float32)
    (h_T, _), _ = jax.lax.scan(step, (h0, c0), x)
    return q(h_T) @ fcw + fc_b[0]


if __name__ == "__main__":
    # Small shapes implied by the module.
    vocab_size, embedding_dim, hidden_dim, output_dim = 64, 16, 32, 4
    batch, seq = 2, 8

    key = jax.random.PRNGKey(0)
    k_emb, k_wih, k_whh, k_b, k_fcw, k_fcb, k_tok = jax.random.split(key, 7)

    embedding = jax.random.normal(k_emb, (vocab_size, embedding_dim), jnp.float32) * 0.1
    # PyTorch weight_ih_l0: (4H, E); stored transposed here -> (E, 4H).
    w_ih = jax.random.normal(k_wih, (embedding_dim, 4 * hidden_dim), jnp.float32) * 0.1
    w_hh = jax.random.normal(k_whh, (hidden_dim, 4 * hidden_dim), jnp.float32) * 0.1
    # Combined bias b_ih + b_hh, kept 2-D (1, 4H) for in-kernel broadcasting.
    b = jax.random.normal(k_b, (1, 4 * hidden_dim), jnp.float32) * 0.1
    fc_w = jax.random.normal(k_fcw, (hidden_dim, output_dim), jnp.float32) * 0.1
    fc_b = jax.random.normal(k_fcb, (1, output_dim), jnp.float32) * 0.1

    token_ids = jax.random.randint(k_tok, (batch, seq), 0, vocab_size, jnp.int32)

    logits = text_classifier_forward(token_ids, embedding, w_ih, w_hh, b, fc_w, fc_b)
    logits = jax.block_until_ready(logits)

    ref = reference_forward(token_ids, embedding, w_ih, w_hh, b, fc_w, fc_b)
    np.testing.assert_allclose(np.asarray(logits), np.asarray(ref),
                               rtol=1e-3, atol=1e-3)

    print("KERNEL_OK")
</pallas_src>

<mosaic_0001>
module attributes {stable_mosaic.version = 11 : i64} {
  func.func @kernel(%arg0: i32, %arg1: memref<64x16xbf16, #tpu.memory_space<vmem>>, %arg2: memref<16x128xbf16, #tpu.memory_space<vmem>>, %arg3: memref<32x128xbf16, #tpu.memory_space<vmem>>, %arg4: memref<1x128xf32, #tpu.memory_space<vmem>>, %arg5: memref<32x4xbf16, #tpu.memory_space<vmem>>, %arg6: memref<1x4xf32, #tpu.memory_space<vmem>>, %arg7: memref<16x4xf32, #tpu.memory_space<vmem>>, %arg8: memref<64x128xf32, #tpu.memory_space<vmem>>, %arg9: memref<16x32xf32, #tpu.memory_space<vmem>>, %arg10: memref<16x32xf32, #tpu.memory_space<vmem>>) attributes {dimension_semantics = [#tpu.dimension_semantics<arbitrary>], iteration_bounds = array<i64: 2>, scalar_prefetch = 0 : i64, scratch_operands = 3 : i64, tpu.core_type = #tpu.core_type<tc>, window_params = [{transform_indices = @transform_0, window_bounds = array<i64: 64, 16>}, {pipeline_mode = #tpu.pipeline_mode<synchronous>, transform_indices = @transform_1, window_bounds = array<i64: 16, 128>}, {pipeline_mode = #tpu.pipeline_mode<synchronous>, transform_indices = @transform_2, window_bounds = array<i64: 32, 128>}, {pipeline_mode = #tpu.pipeline_mode<synchronous>, transform_indices = @transform_3, window_bounds = array<i64: 1, 128>}, {pipeline_mode = #tpu.pipeline_mode<synchronous>, transform_indices = @transform_4, window_bounds = array<i64: 32, 4>}, {pipeline_mode = #tpu.pipeline_mode<synchronous>, transform_indices = @transform_5, window_bounds = array<i64: 1, 4>}, {pipeline_mode = #tpu.pipeline_mode<synchronous>, transform_indices = @transform_6, window_bounds = array<i64: 16, 4>}]} {
    %c0_i32 = arith.constant 0 : i32
    %0 = arith.cmpi eq, %arg0, %c0_i32 : i32
    %1 = arith.extui %0 : i1 to i32
    %c0_i32_0 = arith.constant 0 : i32
    %2 = arith.cmpi ne, %1, %c0_i32_0 : i32
    scf.if %2 {
      %cst_36 = arith.constant 0.000000e+00 : f32
      %106 = vector.broadcast %cst_36 : f32 to vector<16x32xf32>
      %c0_37 = arith.constant 0 : index
      %c0_38 = arith.constant 0 : index
      %107 = vector.load %arg9[%c0_37, %c0_38] : memref<16x32xf32, #tpu.memory_space<vmem>>, vector<16x32xf32>
      tpu.vector_store %arg9[%c0_37, %c0_38], %106 {strides = array<i32>} : memref<16x32xf32, #tpu.memory_space<vmem>>, vector<16x32xf32>,
      %cst_39 = arith.constant 0.000000e+00 : f32
      %108 = vector.broadcast %cst_39 : f32 to vector<16x32xf32>
      %c0_40 = arith.constant 0 : index
      %c0_41 = arith.constant 0 : index
      %109 = vector.load %arg10[%c0_40, %c0_41] : memref<16x32xf32, #tpu.memory_space<vmem>>, vector<16x32xf32>
      tpu.vector_store %arg10[%c0_40, %c0_41], %108 {strides = array<i32>} : memref<16x32xf32, #tpu.memory_space<vmem>>, vector<16x32xf32>,
    } else {
    }
    %c0 = arith.constant 0 : index
    %c0_1 = arith.constant 0 : index
    %3 = vector.load %arg1[%c0, %c0_1] : memref<64x16xbf16, #tpu.memory_space<vmem>>, vector<64x16xbf16>
    %c0_2 = arith.constant 0 : index
    %c0_3 = arith.constant 0 : index
    %4 = vector.load %arg2[%c0_2, %c0_3] : memref<16x128xbf16, #tpu.memory_space<vmem>>, vector<16x128xbf16>
    %cst = arith.constant dense<0.000000e+00> : vector<64x128xf32>
    %5 = tpu.matmul %3, %4, %cst {dimension_numbers = #tpu.dot_dimension_numbers<[1], [0], [0], [1], [0, 0, 1, 1], [], []>} : vector<64x16xbf16>, vector<16x128xbf16>, vector<64x128xf32> -> vector<64x128xf32>
    %c0_4 = arith.constant 0 : index
    %c0_5 = arith.constant 0 : index
    %6 = vector.load %arg4[%c0_4, %c0_5] : memref<1x128xf32, #tpu.memory_space<vmem>>, vector<1x128xf32>
    %7 = vector.broadcast %6 : vector<1x128xf32> to vector<64x128xf32>
    %8 = arith.addf %5, %7 : vector<64x128xf32>
    %c0_6 = arith.constant 0 : index
    %c0_7 = arith.constant 0 : index
    %9 = vector.load %arg8[%c0_6, %c0_7] : memref<64x128xf32, #tpu.memory_space<vmem>>, vector<64x128xf32>
    tpu.vector_store %arg8[%c0_6, %c0_7], %8 {strides = array<i32>} : memref<64x128xf32, #tpu.memory_space<vmem>>, vector<64x128xf32>,
    %c0_8 = arith.constant 0 : index
    %c0_9 = arith.constant 0 : index
    %10 = vector.load %arg3[%c0_8, %c0_9] : memref<32x128xbf16, #tpu.memory_space<vmem>>, vector<32x128xbf16>
    %c0_10 = arith.constant 0 : index
    %c0_11 = arith.constant 0 : index
    %11 = vector.load %arg9[%c0_10, %c0_11] : memref<16x32xf32, #tpu.memory_space<vmem>>, vector<16x32xf32>
    %c0_12 = arith.constant 0 : index
    %c0_13 = arith.constant 0 : index
    %12 = vector.load %arg10[%c0_12, %c0_13] : memref<16x32xf32, #tpu.memory_space<vmem>>, vector<16x32xf32>
    %c0_i32_14 = arith.constant 0 : i32
    %c16_i32 = arith.constant 16 : i32
    %13 = arith.muli %c0_i32_14, %c16_i32 : i32
    %14 = tpu.assume_multiple %13, 16 : i32
    %15 = arith.index_cast %14 : i32 to index
    %c0_15 = arith.constant 0 : index
    %16 = vector.load %arg8[%15, %c0_15] : memref<64x128xf32, #tpu.memory_space<vmem>>, vector<16x128xf32>
    %17 = arith.truncf %11 : vector<16x32xf32> to vector<16x32xbf16>
    %cst_16 = arith.constant dense<0.000000e+00> : vector<16x128xf32>
    %18 = tpu.matmul %17, %10, %cst_16 {dimension_numbers = #tpu.dot_dimension_numbers<[1], [0], [0], [1], [0, 0, 1, 1], [], []>} : vector<16x32xbf16>, vector<32x128xbf16>, vector<16x128xf32> -> vector<16x128xf32>
    %19 = arith.addf %16, %18 : vector<16x128xf32>
    %20 = arith.negf %19 : vector<16x128xf32>
    %21 = math.exp %20 : vector<16x128xf32>
    %cst_17 = arith.constant 1.000000e+00 : f32
    %22 = vector.broadcast %cst_17 : f32 to vector<16x128xf32>
    %23 = arith.addf %22, %21 : vector<16x128xf32>
    %24 = arith.divf %22, %23 : vector<16x128xf32>
    %25 = vector.extract_strided_slice %19 {offsets = [0, 64], sizes = [16, 32], strides = [1, 1]} : vector<16x128xf32> to vector<16x32xf32>
    %26 = math.tanh %25 : vector<16x32xf32>
    %27 = vector.extract_strided_slice %24 {offsets = [0, 32], sizes = [16, 32], strides = [1, 1]} : vector<16x128xf32> to vector<16x32xf32>
    %28 = arith.mulf %27, %12 : vector<16x32xf32>
    %29 = vector.extract_strided_slice %24 {offsets = [0, 0], sizes = [16, 32], strides = [1, 1]} : vector<16x128xf32> to vector<16x32xf32>
    %30 = arith.mulf %29, %26 : vector<16x32xf32>
    %31 = arith.addf %28, %30 : vector<16x32xf32>
    %32 = vector.extract_strided_slice %24 {offsets = [0, 96], sizes = [16, 32], strides = [1, 1]} : vector<16x128xf32> to vector<16x32xf32>
    %33 = math.tanh %31 : vector<16x32xf32>
    %34 = arith.mulf %32, %33 : vector<16x32xf32>
    %c1_i32 = arith.constant 1 : i32
    %c16_i32_18 = arith.constant 16 : i32
    %35 = arith.muli %c1_i32, %c16_i32_18 : i32
    %36 = tpu.assume_multiple %35, 16 : i32
    %37 = arith.index_cast %36 : i32 to index
    %c0_19 = arith.constant 0 : index
    %38 = vector.load %arg8[%37, %c0_19] : memref<64x128xf32, #tpu.memory_space<vmem>>, vector<16x128xf32>
    %39 = arith.truncf %34 : vector<16x32xf32> to vector<16x32xbf16>
    %cst_20 = arith.constant dense<0.000000e+00> : vector<16x128xf32>
    %40 = tpu.matmul %39, %10, %cst_20 {dimension_numbers = #tpu.dot_dimension_numbers<[1], [0], [0], [1], [0, 0, 1, 1], [], []>} : vector<16x32xbf16>, vector<32x128xbf16>, vector<16x128xf32> -> vector<16x128xf32>
    %41 = arith.addf %38, %40 : vector<16x128xf32>
    %42 = arith.negf %41 : vector<16x128xf32>
    %43 = math.exp %42 : vector<16x128xf32>
    %cst_21 = arith.constant 1.000000e+00 : f32
    %44 = vector.broadcast %cst_21 : f32 to vector<16x128xf32>
    %45 = arith.addf %44, %43 : vector<16x128xf32>
    %46 = arith.divf %44, %45 : vector<16x128xf32>
    %47 = vector.extract_strided_slice %41 {offsets = [0, 64], sizes = [16, 32], strides = [1, 1]} : vector<16x128xf32> to vector<16x32xf32>
    %48 = math.tanh %47 : vector<16x32xf32>
    %49 = vector.extract_strided_slice %46 {offsets = [0, 32], sizes = [16, 32], strides = [1, 1]} : vector<16x128xf32> to vector<16x32xf32>
    %50 = arith.mulf %49, %31 : vector<16x32xf32>
    %51 = vector.extract_strided_slice %46 {offsets = [0, 0], sizes = [16, 32], strides = [1, 1]} : vector<16x128xf32> to vector<16x32xf32>
    %52 = arith.mulf %51, %48 : vector<16x32xf32>
    %53 = arith.addf %50, %52 : vector<16x32xf32>
    %54 = vector.extract_strided_slice %46 {offsets = [0, 96], sizes = [16, 32], strides = [1, 1]} : vector<16x128xf32> to vector<16x32xf32>
    %55 = math.tanh %53 : vector<16x32xf32>
    %56 = arith.mulf %54, %55 : vector<16x32xf32>
    %c2_i32 = arith.constant 2 : i32
    %c16_i32_22 = arith.constant 16 : i32
    %57 = arith.muli %c2_i32, %c16_i32_22 : i32
    %58 = tpu.assume_multiple %57, 16 : i32
    %59 = arith.index_cast %58 : i32 to index
    %c0_23 = arith.constant 0 : index
    %60 = vector.load %arg8[%59, %c0_23] : memref<64x128xf32, #tpu.memory_space<vmem>>, vector<16x128xf32>
    %61 = arith.truncf %56 : vector<16x32xf32> to vector<16x32xbf16>
    %cst_24 = arith.constant dense<0.000000e+00> : vector<16x128xf32>
    %62 = tpu.matmul %61, %10, %cst_24 {dimension_numbers = #tpu.dot_dimension_numbers<[1], [0], [0], [1], [0, 0, 1, 1], [], []>} : vector<16x32xbf16>, vector<32x128xbf16>, vector<16x128xf32> -> vector<16x128xf32>
    %63 = arith.addf %60, %62 : vector<16x128xf32>
    %64 = arith.negf %63 : vector<16x128xf32>
    %65 = math.exp %64 : vector<16x128xf32>
    %cst_25 = arith.constant 1.000000e+00 : f32
    %66 = vector.broadcast %cst_25 : f32 to vector<16x128xf32>
    %67 = arith.addf %66, %65 : vector<16x128xf32>
    %68 = arith.divf %66, %67 : vector<16x128xf32>
    %69 = vector.extract_strided_slice %63 {offsets = [0, 64], sizes = [16, 32], strides = [1, 1]} : vector<16x128xf32> to vector<16x32xf32>
    %70 = math.tanh %69 : vector<16x32xf32>
    %71 = vector.extract_strided_slice %68 {offsets = [0, 32], sizes = [16, 32], strides = [1, 1]} : vector<16x128xf32> to vector<16x32xf32>
    %72 = arith.mulf %71, %53 : vector<16x32xf32>
    %73 = vector.extract_strided_slice %68 {offsets = [0, 0], sizes = [16, 32], strides = [1, 1]} : vector<16x128xf32> to vector<16x32xf32>
    %74 = arith.mulf %73, %70 : vector<16x32xf32>
    %75 = arith.addf %72, %74 : vector<16x32xf32>
    %76 = vector.extract_strided_slice %68 {offsets = [0, 96], sizes = [16, 32], strides = [1, 1]} : vector<16x128xf32> to vector<16x32xf32>
    %77 = math.tanh %75 : vector<16x32xf32>
    %78 = arith.mulf %76, %77 : vector<16x32xf32>
    %c3_i32 = arith.constant 3 : i32
    %c16_i32_26 = arith.constant 16 : i32
    %79 = arith.muli %c3_i32, %c16_i32_26 : i32
    %80 = tpu.assume_multiple %79, 16 : i32
    %81 = arith.index_cast %80 : i32 to index
    %c0_27 = arith.constant 0 : index
    %82 = vector.load %arg8[%81, %c0_27] : memref<64x128xf32, #tpu.memory_space<vmem>>, vector<16x128xf32>
    %83 = arith.truncf %78 : vector<16x32xf32> to vector<16x32xbf16>
    %cst_28 = arith.constant dense<0.000000e+00> : vector<16x128xf32>
    %84 = tpu.matmul %83, %10, %cst_28 {dimension_numbers = #tpu.dot_dimension_numbers<[1], [0], [0], [1], [0, 0, 1, 1], [], []>} : vector<16x32xbf16>, vector<32x128xbf16>, vector<16x128xf32> -> vector<16x128xf32>
    %85 = arith.addf %82, %84 : vector<16x128xf32>
    %86 = arith.negf %85 : vector<16x128xf32>
    %87 = math.exp %86 : vector<16x128xf32>
    %cst_29 = arith.constant 1.000000e+00 : f32
    %88 = vector.broadcast %cst_29 : f32 to vector<16x128xf32>
    %89 = arith.addf %88, %87 : vector<16x128xf32>
    %90 = arith.divf %88, %89 : vector<16x128xf32>
    %91 = vector.extract_strided_slice %85 {offsets = [0, 64], sizes = [16, 32], strides = [1, 1]} : vector<16x128xf32> to vector<16x32xf32>
    %92 = math.tanh %91 : vector<16x32xf32>
    %93 = vector.extract_strided_slice %90 {offsets = [0, 32], sizes = [16, 32], strides = [1, 1]} : vector<16x128xf32> to vector<16x32xf32>
    %94 = arith.mulf %93, %75 : vector<16x32xf32>
    %95 = vector.extract_strided_slice %90 {offsets = [0, 0], sizes = [16, 32], strides = [1, 1]} : vector<16x128xf32> to vector<16x32xf32>
    %96 = arith.mulf %95, %92 : vector<16x32xf32>
    %97 = arith.addf %94, %96 : vector<16x32xf32>
    %98 = vector.extract_strided_slice %90 {offsets = [0, 96], sizes = [16, 32], strides = [1, 1]} : vector<16x128xf32> to vector<16x32xf32>
    %99 = math.tanh %97 : vector<16x32xf32>
    %100 = arith.mulf %98, %99 : vector<16x32xf32>
    %c4_i32 = arith.constant 4 : i32
    %c0_30 = arith.constant 0 : index
    %c0_31 = arith.constant 0 : index
    %101 = vector.load %arg9[%c0_30, %c0_31] : memref<16x32xf32, #tpu.memory_space<vmem>>, vector<16x32xf32>
    tpu.vector_store %arg9[%c0_30, %c0_31], %100 {strides = array<i32>} : memref<16x32xf32, #tpu.memory_space<vmem>>, vector<16x32xf32>,
    %c0_32 = arith.constant 0 : index
    %c0_33 = arith.constant 0 : index
    %102 = vector.load %arg10[%c0_32, %c0_33] : memref<16x32xf32, #tpu.memory_space<vmem>>, vector<16x32xf32>
    tpu.vector_store %arg10[%c0_32, %c0_33], %97 {strides = array<i32>} : memref<16x32xf32, #tpu.memory_space<vmem>>, vector<16x32xf32>,
    %c1_i32_34 = arith.constant 1 : i32
    %103 = arith.cmpi eq, %arg0, %c1_i32_34 : i32
    %104 = arith.extui %103 : i1 to i32
    %c0_i32_35 = arith.constant 0 : i32
    %105 = arith.cmpi ne, %104, %c0_i32_35 : i32
    scf.if %105 {
      %c0_36 = arith.constant 0 : index
      %c0_37 = arith.constant 0 : index
      %106 = vector.load %arg9[%c0_36, %c0_37] : memref<16x32xf32, #tpu.memory_space<vmem>>, vector<16x32xf32>
      %107 = arith.truncf %106 : vector<16x32xf32> to vector<16x32xbf16>
      %c0_38 = arith.constant 0 : index
      %c0_39 = arith.constant 0 : index
      %108 = vector.load %arg5[%c0_38, %c0_39] : memref<32x4xbf16, #tpu.memory_space<vmem>>, vector<32x4xbf16>
      %cst_40 = arith.constant dense<0.000000e+00> : vector<16x4xf32>
      %109 = tpu.matmul %107, %108, %cst_40 {dimension_numbers = #tpu.dot_dimension_numbers<[1], [0], [0], [1], [0, 0, 1, 1], [], []>} : vector<16x32xbf16>, vector<32x4xbf16>, vector<16x4xf32> -> vector<16x4xf32>
      %c0_41 = arith.constant 0 : index
      %c0_42 = arith.constant 0 : index
      %110 = vector.load %arg6[%c0_41, %c0_42] : memref<1x4xf32, #tpu.memory_space<vmem>>, vector<1x4xf32>
      %111 = vector.broadcast %110 : vector<1x4xf32> to vector<16x4xf32>
      %112 = arith.addf %109, %111 : vector<16x4xf32>
      %c0_43 = arith.constant 0 : index
      %c0_44 = arith.constant 0 : index
      %113 = vector.load %arg7[%c0_43, %c0_44] : memref<16x4xf32, #tpu.memory_space<vmem>>, vector<16x4xf32>
      tpu.vector_store %arg7[%c0_43, %c0_44], %112 {strides = array<i32>} : memref<16x4xf32, #tpu.memory_space<vmem>>, vector<16x4xf32>,
    } else {
    }
    return
  }
  func.func @transform_0(%arg0: i32) -> (i32, i32) {
    %c0_i32 = arith.constant 0 : i32
    %c0_i32_0 = arith.constant 0 : i32
    return %arg0, %c0_i32 : i32, i32
  }
  func.func @transform_1(%arg0: i32) -> (i32, i32) {
    %c0_i32 = arith.constant 0 : i32
    %c0_i32_0 = arith.constant 0 : i32
    %c0_i32_1 = arith.constant 0 : i32
    return %c0_i32, %c0_i32_0 : i32, i32
  }
  func.func @transform_2(%arg0: i32) -> (i32, i32) {
    %c0_i32 = arith.constant 0 : i32
    %c0_i32_0 = arith.constant 0 : i32
    %c0_i32_1 = arith.constant 0 : i32
    return %c0_i32, %c0_i32_0 : i32, i32
  }
  func.func @transform_3(%arg0: i32) -> (i32, i32) {
    %c0_i32 = arith.constant 0 : i32
    %c0_i32_0 = arith.constant 0 : i32
    %c0_i32_1 = arith.constant 0 : i32
    return %c0_i32, %c0_i32_0 : i32, i32
  }
  func.func @transform_4(%arg0: i32) -> (i32, i32) {
    %c0_i32 = arith.constant 0 : i32
    %c0_i32_0 = arith.constant 0 : i32
    %c0_i32_1 = arith.constant 0 : i32
    return %c0_i32, %c0_i32_0 : i32, i32
  }
  func.func @transform_5(%arg0: i32) -> (i32, i32) {
    %c0_i32 = arith.constant 0 : i32
    %c0_i32_0 = arith.constant 0 : i32
    %c0_i32_1 = arith.constant 0 : i32
    return %c0_i32, %c0_i32_0 : i32, i32
  }
  func.func @transform_6(%arg0: i32) -> (i32, i32) {
    %c0_i32 = arith.constant 0 : i32
    %c0_i32_0 = arith.constant 0 : i32
    %c0_i32_1 = arith.constant 0 : i32
    return %c0_i32, %c0_i32_0 : i32, i32
  }
}

</mosaic_0001>

<bundles_post_ra>
// kernel: tpu_custom_call.1
= control target key start
LH: loop header
LB: loop body
LE: loop exit
PB: predicated region body
PF: predicated region fallthrough
CT: control target
= control target key end

     0   :  { %s1057_s21 = smov 0   ;;  %s1193_s0 = inlined_call_operand.vmem [shape: bf16[128,16], index: 0, kind: input, shape index: {}]   ;;  %s1194_s1 = inlined_call_operand.vmem [shape: bf16[16,128], index: 1, kind: input, shape index: {}]   ;;  %s1195_s2 = inlined_call_operand.vmem [shape: bf16[32,128], index: 2, kind: input, shape index: {}]   ;;  %s1196_s3 = inlined_call_operand.vmem [shape: f32[1,128], index: 3, kind: input, shape index: {}]   ;;  %s1197_s4 = inlined_call_operand.vmem [shape: bf16[32,4], index: 4, kind: input, shape index: {}]   ;;  %s1198_s5 = inlined_call_operand.vmem [shape: f32[1,4], index: 5, kind: input, shape index: {}]   ;;  %s1199_s6 = inlined_call_operand.vmem [shape: f32[16,4], index: 6, kind: output, shape index: {}]  }
   0x1 LB: > { %s1063_s22 = sadd.s32 4294967295, %s1016_s21   ;;  %p862_p0 = scmp.ge.s32.totalorder %s1016_s21, 1  ;;  %s1016_s21 = sphi %s1057_s21, %s16_s21  }
   0x2   : > { %p208_p1 = scmp.lt.s32.totalorder %s1016_s21, 3 }
   0x4   : > { %p209_p2 = pnand %p862_p0, %p208_p1 }
   0x5   : > { %s863_s23 = sshll.u32 (!%p209_p2), %s1063_s22, 3  ;;  %p865_p4 = scmp.ne.s32.totalorder (!%p209_p2), %s1063_s22, 0 }
   0x6   : > { %212 = sbr.rel (%p209_p2) target bundleno = 2538 (0x9ea), region = 44  ;;  %p234_p3 = scmp.lt.s32.totalorder (!%p209_p2), %s863_s23, 15 }
   0xb   : > { %s1201_s23 = smov (!%p234_p3, %s863_s23), 15  ;;  %243 = sbr.rel (%p865_p4) target bundleno = 21 (0x15), region = 48 }
   0xc   : > { %s864_s24 = sshll.u32 %s1201_s23, 2 }
   0xd   : > { %s1071_s27 = scalar_lea.vmem %s1193_s0, %s864_s24 }
  0x10   : > { %vm244_vm0 = vcmask 261120   ;;  %v1018_v0 = vmov 0.0  }
  0x11   : > { %245 = vst.msk [vmem:[#allocation3] sm:$0xff] %vm244_vm0, %v1018_v0 }
  0x12   : > { %246 = vst.msk [vmem:[#allocation3 + $0x8] sm:$0xff] %vm244_vm0, %v1018_v0 }
  0x13   : > { %247 = vst.msk [vmem:[#allocation4] sm:$0xff] %vm244_vm0, %v1018_v0 }
  0x14   : > { %248 = vst.msk [vmem:[#allocation4 + $0x8] sm:$0xff] %vm244_vm0, %v1018_v0 }
  0x15 PF: > { %v926_v1 = vld [vmem:[%s1194_s1] sm:$0xff]  ;;  %v928_v2 = vld [vmem:[%s1195_s2 + $0x8] sm:$0xff]  ;;  %vm289_vm1 = vcmask 130048   ;;  %s1019_s10 = smov 32   ;;  %vm362_vm2 = vcmask 261120   ;;  %s1020_s13 = smov 64  }
  0x16   : > { %v922_v3 = vld [vmem:[%s1071_s27] sm:$0xff]  ;;  %309 = vmatpush.bf16.msra.mxu0 %v926_v1  ;;  %372 = vmatpush.bf16.msra.mxu1 %v928_v2  ;;  %v925_v61 = vld [vmem:[%s1071_s27 + $0x18] sm:$0xff]  ;;  %v923_v62 = vld [vmem:[%s1071_s27 + $0x8] sm:$0xff]  ;;  %s1021_s14 = smov 96   ;;  %p910_p5 = scmp.ne.s32.totalorder %s1063_s22, 1 }
  0x17   : > { %v927_v4 = vld [vmem:[%s1195_s2] sm:$0xff]  ;;  %931 = vmatpush.bf16.msra.mxu2 %v926_v1  ;;  %580 = vmatpush.bf16.msra.mxu3 %v928_v2 }
  0x18   : > { %v343_v5 = vld [vmem:[#allocation3] sm:$0xff] }
  0x19   : > { %v344_v6 = vld [vmem:[#allocation3 + $0x8] sm:$0xff]  ;;  %886 = vmatmul.msk.bf16.vlgmr.msra.gmra.mxu0 %vm289_vm1, %v922_v3  ;;  %v1091_v10 = vld [vmem:[%s1196_s3] ss:$0 sm:$0xff] }
  0x1a   : > { %v345_v7 = vld [vmem:[#allocation4] sm:$0xff]  ;;  %v349_v8 = vpack.c.bf16 %v344_v6, %v343_v5  ;;  %373 = vmatpush.bf16.msra.mxu1 %v927_v4  ;;  %889 = vmatmul.msk.bf16.vlgmr.msra.gmra.mxu2 %vm289_vm1, %v925_v61 }
  0x1b   : > { %424 = vrot.lane.b32.xlu1 %v345_v7, %s1019_s10  ;;  %480 = vmatpush.bf16.msrb.mxu2 %v928_v2  ;;  %v346_v9 = vld [vmem:[#allocation4 + $0x8] sm:$0xff] }
  0x1c   : > { %581 = vmatpush.bf16.msra.mxu3 %v927_v4 }
  0x1d   : > { %898 = vmatmul.msk.bf16.vlgmr.msra.gmra.mxu1 %vm362_vm2, %v349_v8 }
  0x1e   : > { %680 = vmatpush.bf16.msrb.mxu1 %v928_v2 }
  0x1f   : > { %481 = vmatpush.bf16.msrb.mxu2 %v927_v4 }
  0x22   : > { %681 = vmatpush.bf16.msrb.mxu1 %v927_v4 }
  0x23   : > { %426 = vrot.lane.b32.xlu1 %v346_v9, %s1019_s10 }
  0x29   : > { %887 = vmatmul.msk.bf16.gmra.mxu0 %vm289_vm1, %v923_v62 }
  0x8d   : > { %v425_v51 = vpop.permute.xlu1 %424 }
  0x95   : > { %v427_v55 = vpop.permute.xlu1 %426 }
  0x96   : > { %v311_v11 = vpop.f32.mrf.mxu0 }
  0x97   : > { %v312_v12 = vadd.f32 %v1091_v10, %v311_v11 }
  0x9a   : > { %v375_v13 = vpop.f32.mrf.mxu1 }
  0x9b   : > { %v380_v14 = vadd.f32 %v375_v13, %v312_v12 }
  0x9d   : > { %945 = vtanh.f32 %v380_v14  ;;  %v899_v21 = vmul.f32 -1.442695, %v380_v14  ;;  %v1113_v5 = vpop.f32.mrf.mxu2 }
  0x9e   : > { %v313_v15 = vpop.f32.mrf.mxu0 }
  0x9f   : > { %v314_v16 = vadd.f32 %v1091_v10, %v313_v15 }
  0xa2   : > { %v377_v17 = vpop.f32.mrf.mxu1 }
  0xa3   : > { %v946_v18 = vpop.eup %945  ;;  %v381_v19 = vadd.f32 %v377_v17, %v314_v16 }
  0xa4   : > { %434 = vrot.lane.b32.xlu0 %v946_v18, %s1020_s13 }
  0xa5   : > { %947 = vtanh.f32 %v381_v19  ;;  %v900_v22 = vmul.f32 -1.442695, %v381_v19  ;;  %v1115_v6 = vpop.f32.mrf.mxu2 }
  0xa6   : > { %949 = vpow2.f32 %v899_v21  ;;  %v316_v7 = vpop.f32.mrf.mxu0 }
  0xa7   : > { %951 = vpow2.f32 %v900_v22  ;;  %v317_v8 = vadd.f32 %v1091_v10, %v316_v7 }
  0xab   : > { %v948_v20 = vpop.eup %947 }
  0xac   : > { %436 = vrot.lane.b32.xlu0 %v948_v20, %s1020_s13  ;;  %v950_v23 = vpop.eup %949 }
  0xad   : > { %v388_v24 = vadd.f32 1.0, %v950_v23  ;;  %v952_v25 = vpop.eup %951 }
  0xae   : > { %v389_v26 = vadd.f32 1.0, %v952_v25  ;;  %v318_v12 = vpop.f32.mrf.mxu0 }
  0xaf   : > { %953 = vrcp.f32 %v388_v24  ;;  %v401_v35 = vand.u32 2147483648, %v388_v24  ;;  %vm395_vm4 = vweird.f32 %v388_v24  ;;  %v399_v36 = vand.u32 2147483647, %v388_v24 }
  0xb0   : > { %955 = vrcp.f32 %v389_v26  ;;  %v416_v44 = vand.u32 2147483648, %v389_v26  ;;  %vm410_vm8 = vweird.f32 %v389_v26  ;;  %v414_v45 = vand.u32 2147483647, %v389_v26 }
  0xb1   : > { %v402_v39 = vor.u32 1.1754944e-38, %v401_v35  ;;  %vm400_vm6 = vcmp.eq.f32.partialorder %v399_v36, 8.507059e+37  ;;  %v319_v13 = vadd.f32 %v1091_v10, %v318_v12 }
  0xb2   : > { %v417_v47 = vor.u32 1.1754944e-38, %v416_v44  ;;  %vm415_vm10 = vcmp.eq.f32.partialorder %v414_v45, 8.507059e+37 }
  0xb5   : > { %v954_v27 = vpop.eup %953 }
  0xb6   : > { %v391_v28 = vmul.f32 %v954_v27, %v388_v24  ;;  %v956_v30 = vpop.eup %955  ;;  %vm396_vm3 = vweird.f32 %v954_v27 }
  0xb7   : > { %v406_v32 = vmul.f32 %v956_v30, %v389_v26  ;;  %vm397_vm5 = vmor %vm395_vm4, %vm396_vm3  ;;  %vm411_vm7 = vweird.f32 %v956_v30 }
  0xb8   : > { %v392_v29 = vsub.f32 1.0, %v391_v28  ;;  %vm412_vm9 = vmor %vm410_vm8, %vm411_vm7 }
  0xb9   : > { %v407_v34 = vsub.f32 1.0, %v406_v32 }
  0xba   : > { %v393_v31 = vmul.f32 %v954_v27, %v392_v29 }
  0xbb   : > { %v408_v38 = vmul.f32 %v956_v30, %v407_v34 }
  0xbc   : > { %v394_v33 = vadd.f32 %v954_v27, %v393_v31 }
  0xbd   : > { %v409_v42 = vadd.f32 %v956_v30, %v408_v38 }
  0xbe   : > { %v398_v37 = vsel %vm397_vm5, %v954_v27, %v394_v33 }
  0xbf   : > { %v403_v40 = vsel %vm400_vm6, %v402_v39, %v398_v37  ;;  %v413_v46 = vsel %vm412_vm9, %v956_v30, %v409_v42 }
  0xc0   : > { %v418_v48 = vsel %vm415_vm10, %v417_v47, %v413_v46  ;;  %v430_v52 = vmul.f32 %v425_v51, %v403_v40 }
  0xc1   : > { %v431_v56 = vmul.f32 %v427_v55, %v418_v48 }
 0x116   : > { %v435_v41 = vpop.permute.xlu0 %434 }
 0x117   : > { %v440_v43 = vmul.f32 %v435_v41, %v403_v40 }
 0x119   : > { %444 = vrot.lane.b32.xlu2 %v440_v43, %s1019_s10 }
 0x11e   : > { %v437_v49 = vpop.permute.xlu0 %436 }
 0x11f   : > { %v441_v50 = vmul.f32 %v437_v49, %v418_v48 }
 0x121   : > { %446 = vrot.lane.b32.xlu2 %v441_v50, %s1019_s10 }
 0x173   : > { %v445_v53 = vpop.permute.xlu2 %444 }
 0x174   : > { %v1099_v54 = vadd.f32 %v445_v53, %v430_v52 }
 0x176   : > { %957 = vtanh.f32 %v1099_v54 }
 0x17b   : > { %v447_v57 = vpop.permute.xlu2 %446 }
 0x17c   : > { %v958_v58 = vpop.eup %957  ;;  %v1102_v59 = vadd.f32 %v447_v57, %v431_v56  ;;  %v924_v57 = vld [vmem:[%s1071_s27 + $0x10] sm:$0xff] }
 0x17d   : > { %456 = vrot.lane.b32.xlu0 %v958_v58, %s1020_s13  ;;  %888 = vmatmul.msk.bf16.gmra.mxu0 %vm289_vm1, %v924_v57 }
 0x17e   : > { %959 = vtanh.f32 %v1102_v59 }
 0x184   : > { %v960_v60 = vpop.eup %959 }
 0x185   : > { %458 = vrot.lane.b32.xlu1 %v960_v60, %s1020_s13 }
 0x1ef   : > { %v457_v63 = vpop.permute.xlu0 %456 }
 0x1f0   : > { %v462_v1 = vmul.f32 %v457_v63, %v403_v40 }
 0x1f7   : > { %v459_v0 = vpop.permute.xlu1 %458 }
 0x1f8   : > { %v463_v2 = vmul.f32 %v459_v0, %v418_v48 }
 0x1fa   : > { %v467_v3 = vpack.c.bf16 %v463_v2, %v462_v1 }
 0x1fc   : > { %469 = vrot.lane.b32.xlu2 %v467_v3, %s1019_s10 }
 0x256   : > { %v470_v4 = vpop.permute.xlu2 %469 }
 0x257   : > { %901 = vmatmul.msk.bf16.vlgmr.msrb.gmra.mxu2 %vm362_vm2, %v470_v4 }
 0x2da   : > { %v483_v9 = vpop.f32.mrf.mxu2 }
 0x2db   : > { %v488_v11 = vadd.f32 %v483_v9, %v317_v8 }
 0x2dd   : > { %961 = vtanh.f32 %v488_v11  ;;  %v902_v18 = vmul.f32 -1.442695, %v488_v11 }
 0x2e2   : > { %v485_v14 = vpop.f32.mrf.mxu2 }
 0x2e3   : > { %v962_v15 = vpop.eup %961  ;;  %v489_v16 = vadd.f32 %v485_v14, %v319_v13 }
 0x2e4   : > { %534 = vrot.lane.b32.xlu0 %v962_v15, %s1020_s13 }
 0x2e5   : > { %963 = vtanh.f32 %v489_v16  ;;  %v903_v19 = vmul.f32 -1.442695, %v489_v16 }
 0x2e6   : > { %965 = vpow2.f32 %v902_v18 }
 0x2e7   : > { %967 = vpow2.f32 %v903_v19 }
 0x2eb   : > { %v964_v17 = vpop.eup %963 }
 0x2ec   : > { %536 = vrot.lane.b32.xlu1 %v964_v17, %s1020_s13  ;;  %v966_v20 = vpop.eup %965 }
 0x2ed   : > { %v496_v21 = vadd.f32 1.0, %v966_v20  ;;  %v968_v22 = vpop.eup %967 }
 0x2ee   : > { %v497_v23 = vadd.f32 1.0, %v968_v22 }
 0x2ef   : > { %969 = vrcp.f32 %v496_v21  ;;  %v509_v32 = vand.u32 2147483648, %v496_v21  ;;  %vm503_vm12 = vweird.f32 %v496_v21  ;;  %v507_v33 = vand.u32 2147483647, %v496_v21 }
 0x2f0   : > { %971 = vrcp.f32 %v497_v23  ;;  %v524_v41 = vand.u32 2147483648, %v497_v23  ;;  %vm518_vm0 = vweird.f32 %v497_v23  ;;  %v522_v42 = vand.u32 2147483647, %v497_v23 }
 0x2f1   : > { %v510_v36 = vor.u32 1.1754944e-38, %v509_v32  ;;  %vm508_vm14 = vcmp.eq.f32.partialorder %v507_v33, 8.507059e+37 }
 0x2f2   : > { %v525_v44 = vor.u32 1.1754944e-38, %v524_v41  ;;  %vm523_vm4 = vcmp.eq.f32.partialorder %v522_v42, 8.507059e+37 }
 0x2f5   : > { %v970_v24 = vpop.eup %969 }
 0x2f6   : > { %v499_v25 = vmul.f32 %v970_v24, %v496_v21  ;;  %v972_v27 = vpop.eup %971  ;;  %vm504_vm11 = vweird.f32 %v970_v24 }
 0x2f7   : > { %v514_v29 = vmul.f32 %v972_v27, %v497_v23  ;;  %vm505_vm13 = vmor %vm503_vm12, %vm504_vm11  ;;  %vm519_vm15 = vweird.f32 %v972_v27 }
 0x2f8   : > { %v500_v26 = vsub.f32 1.0, %v499_v25  ;;  %vm520_vm3 = vmor %vm518_vm0, %vm519_vm15 }
 0x2f9   : > { %v515_v31 = vsub.f32 1.0, %v514_v29 }
 0x2fa   : > { %v501_v28 = vmul.f32 %v970_v24, %v500_v26 }
 0x2fb   : > { %v516_v35 = vmul.f32 %v972_v27, %v515_v31 }
 0x2fc   : > { %v502_v30 = vadd.f32 %v970_v24, %v501_v28 }
 0x2fd   : > { %v517_v40 = vadd.f32 %v972_v27, %v516_v35 }
 0x2fe   : > { %v506_v34 = vsel %vm505_vm13, %v970_v24, %v502_v30 }
 0x2ff   : > { %v511_v38 = vsel %vm508_vm14, %v510_v36, %v506_v34  ;;  %v521_v43 = vsel %vm520_vm3, %v972_v27, %v517_v40 }
 0x300   : > { %v526_v46 = vsel %vm523_vm4, %v525_v44, %v521_v43  ;;  %v530_v48 = vmul.f32 %v511_v38, %v1099_v54 }
 0x301   : > { %v531_v52 = vmul.f32 %v526_v46, %v1102_v59  ;;  %v321_v59 = vpop.f32.mrf.mxu0 }
 0x302   : > { %v322_v0 = vadd.f32 %v1091_v10, %v321_v59 }
 0x309   : > { %v323_v3 = vpop.f32.mrf.mxu0 }
 0x30a   : > { %v324_v4 = vadd.f32 %v1091_v10, %v323_v3 }
 0x356   : > { %v535_v37 = vpop.permute.xlu0 %534 }
 0x357   : > { %v540_v39 = vmul.f32 %v535_v37, %v511_v38 }
 0x359   : > { %544 = vrot.lane.b32.xlu2 %v540_v39, %s1019_s10 }
 0x35e   : > { %v537_v45 = vpop.permute.xlu1 %536 }
 0x35f   : > { %v541_v47 = vmul.f32 %v537_v45, %v526_v46 }
 0x361   : > { %546 = vrot.lane.b32.xlu0 %v541_v47, %s1019_s10 }
 0x3b3   : > { %v545_v49 = vpop.permute.xlu2 %544 }
 0x3b4   : > { %v1124_v50 = vadd.f32 %v545_v49, %v530_v48 }
 0x3b6   : > { %973 = vtanh.f32 %v1124_v50 }
 0x3bc   : > { %v974_v51 = vpop.eup %973 }
 0x3bd   : > { %556 = vrot.lane.b32.xlu1 %v974_v51, %s1020_s13 }
 0x3d3   : > { %v547_v53 = vpop.permute.xlu0 %546 }
 0x3d4   : > { %v1129_v55 = vadd.f32 %v547_v53, %v531_v52 }
 0x3d6   : > { %975 = vtanh.f32 %v1129_v55 }
 0x3dc   : > { %v976_v56 = vpop.eup %975 }
 0x3dd   : > { %558 = vrot.lane.b32.xlu2 %v976_v56, %s1020_s13 }
 0x42f   : > { %v557_v54 = vpop.permute.xlu1 %556 }
 0x430   : > { %v562_v60 = vmul.f32 %v557_v54, %v511_v38 }
 0x437   : > { %v559_v58 = vpop.permute.xlu2 %558 }
 0x438   : > { %v563_v61 = vmul.f32 %v559_v58, %v526_v46 }
 0x43a   : > { %v567_v62 = vpack.c.bf16 %v563_v61, %v562_v60  ;;  %v329_v60 = vadd.f32 %v1091_v10, %v1115_v6 }
 0x43c   : > { %569 = vrot.lane.b32.xlu0 %v567_v62, %s1019_s10 }
 0x4ae   : > { %v570_v63 = vpop.permute.xlu0 %569 }
 0x4af   : > { %904 = vmatmul.msk.bf16.vlgmr.msra.gmra.mxu3 %vm362_vm2, %v570_v63 }
 0x532   : > { %v583_v1 = vpop.f32.mrf.mxu3 }
 0x533   : > { %v588_v2 = vadd.f32 %v583_v1, %v322_v0 }
 0x535   : > { %977 = vtanh.f32 %v588_v2  ;;  %v905_v15 = vmul.f32 -1.442695, %v588_v2 }
 0x53a   : > { %v585_v7 = vpop.f32.mrf.mxu3 }
 0x53b   : > { %v978_v8 = vpop.eup %977  ;;  %v589_v9 = vadd.f32 %v585_v7, %v324_v4 }
 0x53c   : > { %634 = vrot.lane.b32.xlu1 %v978_v8, %s1020_s13 }
 0x53d   : > { %979 = vtanh.f32 %v589_v9  ;;  %v906_v12 = vmul.f32 -1.442695, %v589_v9 }
 0x53f   : > { %981 = vpow2.f32 %v906_v12 }
 0x543   : > { %v980_v11 = vpop.eup %979 }
 0x544   : > { %636 = vrot.lane.b32.xlu2 %v980_v11, %s1020_s13 }
 0x545   : > { %v982_v13 = vpop.eup %981 }
 0x546   : > { %v597_v14 = vadd.f32 1.0, %v982_v13 }
 0x548   : > { %983 = vrcp.f32 %v597_v14  ;;  %v624_v24 = vand.u32 2147483648, %v597_v14  ;;  %vm618_vm5 = vweird.f32 %v597_v14  ;;  %v622_v25 = vand.u32 2147483647, %v597_v14 }
 0x549   : > { %985 = vpow2.f32 %v905_v15 }
 0x54a   : > { %v625_v28 = vor.u32 1.1754944e-38, %v624_v24  ;;  %vm623_vm7 = vcmp.eq.f32.partialorder %v622_v25, 8.507059e+37 }
 0x54e   : > { %v984_v16 = vpop.eup %983 }
 0x54f   : > { %v986_v17 = vpop.eup %985  ;;  %v614_v18 = vmul.f32 %v984_v16, %v597_v14  ;;  %vm619_vm1 = vweird.f32 %v984_v16 }
 0x550   : > { %v596_v19 = vadd.f32 1.0, %v986_v17  ;;  %vm620_vm6 = vmor %vm618_vm5, %vm619_vm1 }
 0x551   : > { %v615_v20 = vsub.f32 1.0, %v614_v18 }
 0x552   : > { %987 = vrcp.f32 %v596_v19  ;;  %v609_v35 = vand.u32 2147483648, %v596_v19  ;;  %vm603_vm9 = vweird.f32 %v596_v19  ;;  %v607_v36 = vand.u32 2147483647, %v596_v19 }
 0x553   : > { %v616_v21 = vmul.f32 %v984_v16, %v615_v20 }
 0x554   : > { %v610_v38 = vor.u32 1.1754944e-38, %v609_v35  ;;  %vm608_vm11 = vcmp.eq.f32.partialorder %v607_v36, 8.507059e+37 }
 0x555   : > { %v617_v22 = vadd.f32 %v984_v16, %v616_v21 }
 0x557   : > { %v621_v26 = vsel %vm620_vm6, %v984_v16, %v617_v22 }
 0x558   : > { %v988_v23 = vpop.eup %987  ;;  %v626_v30 = vsel %vm623_vm7, %v625_v28, %v621_v26 }
 0x559   : > { %v599_v27 = vmul.f32 %v988_v23, %v596_v19  ;;  %vm604_vm8 = vweird.f32 %v988_v23  ;;  %v631_v42 = vmul.f32 %v626_v30, %v1129_v55 }
 0x55a   : > { %vm605_vm10 = vmor %vm603_vm9, %vm604_vm8 }
 0x55b   : > { %v600_v32 = vsub.f32 1.0, %v599_v27 }
 0x55d   : > { %v601_v33 = vmul.f32 %v988_v23, %v600_v32 }
 0x55f   : > { %v602_v34 = vadd.f32 %v988_v23, %v601_v33 }
 0x561   : > { %v606_v37 = vsel %vm605_vm10, %v988_v23, %v602_v34 }
 0x562   : > { %v611_v40 = vsel %vm608_vm11, %v610_v38, %v606_v37 }
 0x563   : > { %v630_v46 = vmul.f32 %v611_v40, %v1124_v50  ;;  %v327_v50 = vadd.f32 %v1091_v10, %v1113_v5 }
 0x59e   : > { %v637_v29 = vpop.permute.xlu2 %636 }
 0x59f   : > { %v641_v31 = vmul.f32 %v637_v29, %v626_v30 }
 0x5a1   : > { %646 = vrot.lane.b32.xlu1 %v641_v31, %s1019_s10 }
 0x5ae   : > { %v635_v39 = vpop.permute.xlu1 %634 }
 0x5af   : > { %v640_v41 = vmul.f32 %v635_v39, %v611_v40 }
 0x5b1   : > { %644 = vrot.lane.b32.xlu0 %v640_v41, %s1019_s10 }
 0x613   : > { %v647_v43 = vpop.permute.xlu1 %646 }
 0x614   : > { %v1144_v44 = vadd.f32 %v647_v43, %v631_v42 }
 0x616   : > { %989 = vtanh.f32 %v1144_v44 }
 0x61c   : > { %v990_v45 = vpop.eup %989 }
 0x61d   : > { %658 = vrot.lane.b32.xlu0 %v990_v45, %s1020_s13 }
 0x623   : > { %v645_v47 = vpop.permute.xlu0 %644 }
 0x624   : > { %v1149_v48 = vadd.f32 %v645_v47, %v630_v46 }
 0x626   : > { %991 = vtanh.f32 %v1149_v48 }
 0x62c   : > { %v992_v49 = vpop.eup %991 }
 0x62d   : > { %656 = vrot.lane.b32.xlu2 %v992_v49, %s1020_s13 }
 0x687   : > { %v657_v51 = vpop.permute.xlu2 %656 }
 0x688   : > { %v662_v53 = vmul.f32 %v657_v51, %v611_v40 }
 0x68f   : > { %v659_v52 = vpop.permute.xlu0 %658 }
 0x690   : > { %v663_v55 = vmul.f32 %v659_v52, %v626_v30 }
 0x692   : > { %v667_v56 = vpack.c.bf16 %v663_v55, %v662_v53 }
 0x694   : > { %669 = vrot.lane.b32.xlu1 %v667_v56, %s1019_s10 }
 0x706   : > { %v670_v57 = vpop.permute.xlu1 %669 }
 0x707   : > { %907 = vmatmul.msk.bf16.vlgmr.msrb.gmra.mxu1 %vm362_vm2, %v670_v57 }
 0x784   : > { %v683_v54 = vpop.f32.mrf.mxu1 }
 0x785   : > { %v688_v58 = vadd.f32 %v683_v54, %v327_v50 }
 0x787   : > { %993 = vtanh.f32 %v688_v58  ;;  %v908_v0 = vmul.f32 -1.442695, %v688_v58 }
 0x78c   : > { %v685_v61 = vpop.f32.mrf.mxu1 }
 0x78d   : > { %v994_v62 = vpop.eup %993  ;;  %v689_v63 = vadd.f32 %v685_v61, %v329_v60 }
 0x78e   : > { %734 = vrot.lane.b32.xlu2 %v994_v62, %s1020_s13 }
 0x78f   : > { %995 = vtanh.f32 %v689_v63  ;;  %v909_v7 = vmul.f32 -1.442695, %v689_v63 }
 0x790   : > { %997 = vpow2.f32 %v908_v0 }
 0x795   : > { %v996_v59 = vpop.eup %995 }
 0x796   : > { %736 = vrot.lane.b32.xlu0 %v996_v59, %s1020_s13  ;;  %v998_v1 = vpop.eup %997 }
 0x797   : > { %v696_v2 = vadd.f32 1.0, %v998_v1 }
 0x799   : > { %999 = vrcp.f32 %v696_v2  ;;  %v709_v6 = vand.u32 2147483648, %v696_v2  ;;  %vm703_vm13 = vweird.f32 %v696_v2  ;;  %v707_v9 = vand.u32 2147483647, %v696_v2 }
 0x79a   : > { %1001 = vpow2.f32 %v909_v7 }
 0x79b   : > { %v710_v13 = vor.u32 1.1754944e-38, %v709_v6  ;;  %vm708_vm15 = vcmp.eq.f32.partialorder %v707_v9, 8.507059e+37 }
 0x79f   : > { %v1000_v5 = vpop.eup %999 }
 0x7a0   : > { %v699_v3 = vmul.f32 %v1000_v5, %v696_v2  ;;  %vm704_vm12 = vweird.f32 %v1000_v5  ;;  %v1002_v11 = vpop.eup %1001 }
 0x7a1   : > { %vm705_vm14 = vmor %vm703_vm13, %vm704_vm12  ;;  %v697_v14 = vadd.f32 1.0, %v1002_v11 }
 0x7a2   : > { %v700_v4 = vsub.f32 1.0, %v699_v3 }
 0x7a3   : > { %1003 = vrcp.f32 %v697_v14  ;;  %v724_v23 = vand.u32 2147483648, %v697_v14  ;;  %vm718_vm3 = vweird.f32 %v697_v14  ;;  %v722_v24 = vand.u32 2147483647, %v697_v14 }
 0x7a4   : > { %v701_v8 = vmul.f32 %v1000_v5, %v700_v4 }
 0x7a5   : > { %v725_v26 = vor.u32 1.1754944e-38, %v724_v23  ;;  %vm723_vm1 = vcmp.eq.f32.partialorder %v722_v24, 8.507059e+37 }
 0x7a6   : > { %v702_v10 = vadd.f32 %v1000_v5, %v701_v8 }
 0x7a8   : > { %v706_v12 = vsel %vm705_vm14, %v1000_v5, %v702_v10 }
 0x7a9   : > { %v711_v16 = vsel %vm708_vm15, %v710_v13, %v706_v12  ;;  %v1004_v18 = vpop.eup %1003 }
 0x7aa   : > { %v714_v19 = vmul.f32 %v1004_v18, %v697_v14  ;;  %vm719_vm0 = vweird.f32 %v1004_v18  ;;  %v730_v30 = vmul.f32 %v711_v16, %v1149_v48 }
 0x7ab   : > { %vm720_vm4 = vmor %vm718_vm3, %vm719_vm0 }
 0x7ac   : > { %v715_v20 = vsub.f32 1.0, %v714_v19 }
 0x7ae   : > { %v716_v21 = vmul.f32 %v1004_v18, %v715_v20 }
 0x7b0   : > { %v717_v22 = vadd.f32 %v1004_v18, %v716_v21 }
 0x7b2   : > { %v721_v25 = vsel %vm720_vm4, %v1004_v18, %v717_v22 }
 0x7b3   : > { %v726_v28 = vsel %vm723_vm1, %v725_v26, %v721_v25 }
 0x7b4   : > { %v731_v33 = vmul.f32 %v726_v28, %v1144_v44 }
 0x7e8   : > { %v735_v15 = vpop.permute.xlu2 %734 }
 0x7e9   : > { %v740_v17 = vmul.f32 %v735_v15, %v711_v16 }
 0x7eb   : > { %744 = vrot.lane.b32.xlu1 %v740_v17, %s1019_s10 }
 0x808   : > { %v737_v27 = vpop.permute.xlu0 %736 }
 0x809   : > { %v741_v29 = vmul.f32 %v737_v27, %v726_v28 }
 0x80b   : > { %746 = vrot.lane.b32.xlu2 %v741_v29, %s1019_s10 }
 0x85d   : > { %v745_v31 = vpop.permute.xlu1 %744 }
 0x85e   : > { %v750_v32 = vadd.f32 %v745_v31, %v730_v30 }
 0x860   : > { %1005 = vtanh.f32 %v750_v32 }
 0x865   : > { %v747_v34 = vpop.permute.xlu2 %746 }
 0x866   : > { %v1006_v35 = vpop.eup %1005  ;;  %v751_v36 = vadd.f32 %v747_v34, %v731_v33 }
 0x867   : > { %756 = vrot.lane.b32.xlu0 %v1006_v35, %s1020_s13 }
 0x868   : > { %1007 = vtanh.f32 %v751_v36 }
 0x86e   : > { %v1008_v37 = vpop.eup %1007 }
 0x86f   : > { %758 = vrot.lane.b32.xlu1 %v1008_v37, %s1020_s13 }
 0x877   : > { %776 = vrot.lane.b32.xlu1 %v750_v32, %s1021_s14 }
 0x8d9   : > { %v757_v38 = vpop.permute.xlu0 %756 }
 0x8da   : > { %v762_v39 = vmul.f32 %v757_v38, %v711_v16 }
 0x8dc   : > { %766 = vrot.lane.b32.xlu2 %v762_v39, %s1019_s10 }
 0x8e1   : > { %v759_v40 = vpop.permute.xlu1 %758 }
 0x8e2   : > { %v763_v41 = vmul.f32 %v759_v40, %v726_v28 }
 0x8e4   : > { %778 = vrot.lane.b32.xlu2 %v751_v36, %s1021_s14  ;;  %768 = vrot.lane.b32.xlu0 %v763_v41, %s1019_s10 }
 0x8e9   : > { %v777_v42 = vpop.permute.xlu1 %776 }
 0x8ea   : > { %782 = vst.msk [vmem:[#allocation4] sm:$0xff] %vm362_vm2, %v777_v42 }
 0x936   : > { %v767_v43 = vpop.permute.xlu2 %766 }
 0x937   : > { %772 = vst.msk [vmem:[#allocation3] sm:$0xff] %vm362_vm2, %v767_v43 }
 0x93e   : > { %v779_v44 = vpop.permute.xlu2 %778 }
 0x93f   : > { %783 = vst.msk [vmem:[#allocation4 + $0x8] sm:$0xff] %vm362_vm2, %v779_v44 }
 0x953   : > { %787 = sbr.rel (%p910_p5) target bundleno = 2538 (0x9ea), region = 52 }
 0x956   : > { %v769_v45 = vpop.permute.xlu0 %768 }
 0x957   : > { %773 = vst.msk [vmem:[#allocation3 + $0x8] sm:$0xff] %vm362_vm2, %v769_v45 }
 0x958   : > { %v930_v46 = vld [vmem:[%s1197_s4 + $0x8] sm:$0xff]  ;;  %v929_v47 = vld [vmem:[%s1197_s4] sm:$0xff]  ;;  %vm828_vm5 = vcmask 31744  }
 0x959   : > { %820 = vmatpush.bf16.msra.mxu0 %v930_v46  ;;  %v788_v48 = vld [vmem:[#allocation3] sm:$0xff] }
 0x95a   : > { %v1009_v52 = vld [vmem:[%s1198_s5] ss:$0 sm:$0xff] }
 0x95d   : > { %821 = vmatpush.bf16.msra.mxu0 %v929_v47 }
 0x95e   : > { %v789_v49 = vld [vmem:[#allocation3 + $0x8] sm:$0xff] }
 0x95f   : > { %v790_v51 = vpack.c.bf16 %v789_v49, %v788_v48 }
 0x961   : > { %919 = vmatmul.msk.bf16.vlgmr.msra.gmra.mxu0 %vm362_vm2, %v790_v51 }
 0x9de   : > { %v823_v53 = vpop.f32.mrf.mxu0 }
 0x9df   : > { %v824_v55 = vadd.f32 %v1009_v52, %v823_v53 }
 0x9e1   : > { %829 = vst.msk [vmem:[%s1199_s6] sm:$0xff] %vm828_vm5, %v824_v55 }
 0x9e6   : > { %v825_v56 = vpop.f32.mrf.mxu0 }
 0x9e7   : > { %v826_v57 = vadd.f32 %v1009_v52, %v825_v56 }
 0x9e9   : > { %830 = vst.msk [vmem:[%s1199_s6 + $0x8] sm:$0xff] %vm828_vm5, %v826_v57 }
 0x9ea PF: > { %s16_s21 = sadd.s32 1, %s1016_s21  }
 0x9eb   : > { %p13_p6 = scmp.ge.s32.totalorder %s16_s21, 4  }
 0x9ed   :  { %15 = sbr.rel (!%p13_p6) target bundleno = 1 (0x1), region = 81 }

</bundles_post_ra>
